<compile_context>
chip_gen: v7x
topology: tpu7x:2x2x1
jax: 0.10.0
libtpu: 0.0.40
codegen_flags: <defaults>
</compile_context>

<pallas_src>
import functools

import jax
import jax.numpy as jnp
from jax.experimental import pallas as pl
from jax.experimental.pallas import tpu as pltpu

GEN_DIM = 128
LATENT_DIM = 128          # must equal GEN_DIM for the residual adds
BN_EPS = 1e-3             # nn.BatchNorm1d(..., eps=0.001)


# --------------------------------------------------------------------------- #
# Kernels
# --------------------------------------------------------------------------- #
def _stats1_kernel(x_ref, w1_ref, s1_ref):
    """Pass A: accumulate per-feature sum / sum-of-squares of h1 = x @ W1."""
    @pl.when(pl.program_id(0) == 0)
    def _():
        s1_ref[...] = jnp.zeros_like(s1_ref)

    h1 = jnp.dot(x_ref[...].astype(jnp.bfloat16), w1_ref[...],
                 preferred_element_type=jnp.float32)
    s1_ref[0:1, :] += jnp.sum(h1, axis=0, keepdims=True)
    s1_ref[1:2, :] += jnp.sum(h1 * h1, axis=0, keepdims=True)


def _scale_shift(s_ref, bn_ref, gamma_row, beta_row, inv_n):
    """Fold batch stats + BN affine into one per-feature (scale, shift)."""
    mu = s_ref[0:1, :] * inv_n
    var = s_ref[1:2, :] * inv_n - mu * mu                 # biased, E[h^2]-mu^2
    scale = bn_ref[gamma_row:gamma_row + 1, :] * jax.lax.rsqrt(var + BN_EPS)
    shift = bn_ref[beta_row:beta_row + 1, :] - mu * scale
    return scale, shift


def _apply1_kernel(x_ref, w1_ref, w2_ref, s1_ref, bn_ref,
                   out1_ref, h2_ref, s2_ref, *, inv_n):
    """Pass B: out1 = ReLU(BN1(x@W1)) + x ; h2 = out1@W2 ; accumulate h2 stats."""
    @pl.when(pl.program_id(0) == 0)
    def _():
        s2_ref[...] = jnp.zeros_like(s2_ref)

    x = x_ref[...]
    h1 = jnp.dot(x.astype(jnp.bfloat16), w1_ref[...],
                 preferred_element_type=jnp.float32)
    scale1, shift1 = _scale_shift(s1_ref, bn_ref, 0, 1, inv_n)
    out1 = jnp.maximum(h1 * scale1 + shift1, 0.0) + x      # ReLU + residual
    out1_ref[...] = out1

    h2 = jnp.dot(out1.astype(jnp.bfloat16), w2_ref[...],
                 preferred_element_type=jnp.float32)
    h2_ref[...] = h2
    s2_ref[0:1, :] += jnp.sum(h2, axis=0, keepdims=True)
    s2_ref[1:2, :] += jnp.sum(h2 * h2, axis=0, keepdims=True)


def _apply2_kernel(out1_ref, h2_ref, s2_ref, bn_ref, out_ref, *, inv_n):
    """Pass C: out2 = tanh(BN2(h2)) + out1."""
    scale2, shift2 = _scale_shift(s2_ref, bn_ref, 2, 3, inv_n)
    out_ref[...] = jnp.tanh(h2_ref[...] * scale2 + shift2) + out1_ref[...]


# --------------------------------------------------------------------------- #
# Wrapper
# --------------------------------------------------------------------------- #
def _pick_tile(b):
    for t in (512, 256, 128, 64, 32, 16, 8):
        if b % t == 0:
            return t
    # TODO(synk): mask padded sublane rows so ragged batches (B % 8 != 0) work.
    raise ValueError("batch size must be a multiple of 8")


def generator_forward(x, params, *, tile_b=None):
    """x: (B, 128) float32.  params: dict from init_params."""
    B, D = x.shape
    assert D == LATENT_DIM == GEN_DIM
    tb = _pick_tile(B) if tile_b is None else tile_b
    assert B % tb == 0 and tb % 8 == 0
    nt = B // tb
    inv_n = 1.0 / float(B)
    f32 = jnp.float32

    # bf16 weights for the MXU (f32 accumulation in-kernel). The Linear biases
    # are dropped: training-mode BN subtracts the batch mean, which cancels them.
    w1 = params["w1_t"].astype(jnp.bfloat16)
    w2 = params["w2_t"].astype(jnp.bfloat16)

    # Pack the per-feature BN affine params into a single aligned (8,128) tile:
    # rows 0..3 = gamma1, beta1, gamma2, beta2.
    bn = jnp.zeros((8, GEN_DIM), f32)
    bn = bn.at[0].set(params["gamma1"].reshape(-1))
    bn = bn.at[1].set(params["beta1"].reshape(-1))
    bn = bn.at[2].set(params["gamma2"].reshape(-1))
    bn = bn.at[3].set(params["beta2"].reshape(-1))

    act_spec = pl.BlockSpec((tb, GEN_DIM), lambda i: (i, 0))
    w_spec = pl.BlockSpec((LATENT_DIM, GEN_DIM), lambda i: (0, 0))
    s_spec = pl.BlockSpec((8, GEN_DIM), lambda i: (0, 0))

    # ---- pass A: full-batch stats of h1 = x @ W1 (reduction over batch tiles) ----
    stats1 = pl.pallas_call(
        _stats1_kernel,
        out_shape=jax.ShapeDtypeStruct((8, GEN_DIM), f32),
        grid=(nt,),
        in_specs=[act_spec, w_spec],
        out_specs=s_spec,
        compiler_params=pltpu.CompilerParams(dimension_semantics=("arbitrary",)),
        cost_estimate=pl.CostEstimate(
            flops=2 * B * D * GEN_DIM,
            transcendentals=0,
            bytes_accessed=B * D * 4 + D * GEN_DIM * 2 + 8 * GEN_DIM * 4),
    )(x, w1)

    # ---- pass B: BN1 apply + ReLU + residual, second matmul, h2 stats ----
    out1, h2, stats2 = pl.pallas_call(
        functools.partial(_apply1_kernel, inv_n=inv_n),
        out_shape=(jax.ShapeDtypeStruct((B, GEN_DIM), f32),
                   jax.ShapeDtypeStruct((B, GEN_DIM), f32),
                   jax.ShapeDtypeStruct((8, GEN_DIM), f32)),
        grid=(nt,),
        in_specs=[act_spec, w_spec, w_spec, s_spec, s_spec],
        out_specs=(act_spec, act_spec, s_spec),
        compiler_params=pltpu.CompilerParams(dimension_semantics=("arbitrary",)),
        cost_estimate=pl.CostEstimate(
            flops=4 * B * D * GEN_DIM,
            transcendentals=0,
            bytes_accessed=3 * B * GEN_DIM * 4 + 2 * D * GEN_DIM * 2
                           + 2 * 8 * GEN_DIM * 4),
    )(x, w1, w2, stats1, bn)

    # ---- pass C: BN2 apply + tanh + residual (fully parallel over batch tiles) ----
    out2 = pl.pallas_call(
        functools.partial(_apply2_kernel, inv_n=inv_n),
        out_shape=jax.ShapeDtypeStruct((B, GEN_DIM), f32),
        grid=(nt,),
        in_specs=[act_spec, act_spec, s_spec, s_spec],
        out_specs=act_spec,
        compiler_params=pltpu.CompilerParams(dimension_semantics=("parallel",)),
        cost_estimate=pl.CostEstimate(
            flops=4 * B * GEN_DIM,
            transcendentals=B * GEN_DIM,
            bytes_accessed=3 * B * GEN_DIM * 4 + 2 * 8 * GEN_DIM * 4),
    )(out1, h2, stats2, bn)

    return out2


# --------------------------------------------------------------------------- #
# Parameters and references
# --------------------------------------------------------------------------- #
def init_params(key):
    """Deterministic synthetic parameters with the module's shapes."""
    k1, k2, k3, k4 = jax.random.split(key, 4)
    scale = 1.0 / jnp.sqrt(jnp.float32(LATENT_DIM))
    # nn.Linear stores (out, in); we keep the transposed (in, out) layout.
    w1_t = jax.random.uniform(k1, (LATENT_DIM, GEN_DIM), jnp.float32, -scale, scale)
    b1 = jax.random.uniform(k2, (1, GEN_DIM), jnp.float32, -scale, scale)
    w2_t = jax.random.uniform(k3, (LATENT_DIM, GEN_DIM), jnp.float32, -scale, scale)
    b2 = jax.random.uniform(k4, (1, GEN_DIM), jnp.float32, -scale, scale)
    gamma = jnp.ones((1, GEN_DIM), jnp.float32)   # BatchNorm1d PyTorch init
    beta = jnp.zeros((1, GEN_DIM), jnp.float32)
    return {
        "w1_t": w1_t, "b1": b1, "gamma1": gamma, "beta1": beta,
        "w2_t": w2_t, "b2": b2, "gamma2": gamma, "beta2": beta,
    }


def reference_forward_f32(x, p):
    """PyTorch-faithful reference: pure f32, includes the Linear biases."""
    h1 = x @ p["w1_t"] + p["b1"]
    mu1 = h1.mean(0, keepdims=True)
    v1 = ((h1 - mu1) ** 2).mean(0, keepdims=True)
    t1 = jnp.maximum((h1 - mu1) * jax.lax.rsqrt(v1 + BN_EPS) * p["gamma1"] + p["beta1"], 0.0)
    out1 = t1 + x
    h2 = out1 @ p["w2_t"] + p["b2"]
    mu2 = h2.mean(0, keepdims=True)
    v2 = ((h2 - mu2) ** 2).mean(0, keepdims=True)
    t2 = jnp.tanh((h2 - mu2) * jax.lax.rsqrt(v2 + BN_EPS) * p["gamma2"] + p["beta2"])
    return t2 + out1


def reference_forward_kernel_math(x, p):
    """Mirrors the kernel's exact math (bf16 dots, folded BN, no bias)."""
    n = x.shape[0]
    w1 = p["w1_t"].astype(jnp.bfloat16)
    w2 = p["w2_t"].astype(jnp.bfloat16)
    h1 = jnp.dot(x.astype(jnp.bfloat16), w1, preferred_element_type=jnp.float32)
    mu1 = h1.sum(0, keepdims=True) / n
    var1 = (h1 * h1).sum(0, keepdims=True) / n - mu1 * mu1
    scale1 = p["gamma1"] * jax.lax.rsqrt(var1 + BN_EPS)
    shift1 = p["beta1"] - mu1 * scale1
    out1 = jnp.maximum(h1 * scale1 + shift1, 0.0) + x
    h2 = jnp.dot(out1.astype(jnp.bfloat16), w2, preferred_element_type=jnp.float32)
    mu2 = h2.sum(0, keepdims=True) / n
    var2 = (h2 * h2).sum(0, keepdims=True) / n - mu2 * mu2
    scale2 = p["gamma2"] * jax.lax.rsqrt(var2 + BN_EPS)
    shift2 = p["beta2"] - mu2 * scale2
    return jnp.tanh(h2 * scale2 + shift2) + out1


if __name__ == "__main__":
    key = jax.random.PRNGKey(0)
    kx, kp = jax.random.split(key)
    B = 256
    x = jax.random.normal(kx, (B, LATENT_DIM), jnp.float32)
    params = init_params(kp)

    # tile_b=64 -> 4 batch tiles: exercises cross-tile (full-batch) BN statistics.
    out = generator_forward(x, params, tile_b=64)
    out = jax.block_until_ready(out)
    assert out.shape == (B, GEN_DIM) and out.dtype == jnp.float32

    # Tight structural check against a reference using the kernel's exact math.
    ref_k = reference_forward_kernel_math(x, params)
    err_k = float(jnp.max(jnp.abs(out - ref_k)))
    assert jnp.allclose(out, ref_k, atol=2e-3, rtol=2e-3), err_k

    # Fidelity to the PyTorch module (pure-f32, with bias); slack covers bf16 matmuls.
    ref_f = reference_forward_f32(x, params)
    err_f = float(jnp.max(jnp.abs(out - ref_f)))
    assert jnp.allclose(out, ref_f, atol=5e-2, rtol=5e-2), err_f

    print("KERNEL_OK")
</pallas_src>

<mosaic_0001>
module attributes {stable_mosaic.version = 11 : i64} {
  func.func @_stats1_kernel(%arg0: i32, %arg1: memref<64x128xf32, #tpu.memory_space<vmem>>, %arg2: memref<128x128xbf16, #tpu.memory_space<vmem>>, %arg3: memref<8x128xf32, #tpu.memory_space<vmem>>) attributes {dimension_semantics = [#tpu.dimension_semantics<arbitrary>], iteration_bounds = array<i64: 4>, scalar_prefetch = 0 : i64, scratch_operands = 0 : i64, tpu.core_type = #tpu.core_type<tc>, window_params = [{transform_indices = @transform_0, window_bounds = array<i64: 64, 128>}, {pipeline_mode = #tpu.pipeline_mode<synchronous>, transform_indices = @transform_1, window_bounds = array<i64: 128, 128>}, {pipeline_mode = #tpu.pipeline_mode<synchronous>, transform_indices = @transform_2, window_bounds = array<i64: 8, 128>}]} {
    %c0_i32 = arith.constant 0 : i32
    %0 = arith.cmpi eq, %arg0, %c0_i32 : i32
    %1 = arith.extui %0 : i1 to i32
    %c0_i32_0 = arith.constant 0 : i32
    %2 = arith.cmpi ne, %1, %c0_i32_0 : i32
    scf.if %2 {
      %cst_13 = arith.constant 0.000000e+00 : f32
      %18 = vector.broadcast %cst_13 : f32 to vector<8x128xf32>
      %c0_14 = arith.constant 0 : index
      %c0_15 = arith.constant 0 : index
      %19 = vector.load %arg3[%c0_14, %c0_15] : memref<8x128xf32, #tpu.memory_space<vmem>>, vector<8x128xf32>
      tpu.vector_store %arg3[%c0_14, %c0_15], %18 {strides = array<i32>} : memref<8x128xf32, #tpu.memory_space<vmem>>, vector<8x128xf32>,
    } else {
    }
    %c0 = arith.constant 0 : index
    %c0_1 = arith.constant 0 : index
    %3 = vector.load %arg1[%c0, %c0_1] : memref<64x128xf32, #tpu.memory_space<vmem>>, vector<64x128xf32>
    %4 = arith.truncf %3 : vector<64x128xf32> to vector<64x128xbf16>
    %c0_2 = arith.constant 0 : index
    %c0_3 = arith.constant 0 : index
    %5 = vector.load %arg2[%c0_2, %c0_3] : memref<128x128xbf16, #tpu.memory_space<vmem>>, vector<128x128xbf16>
    %cst = arith.constant dense<0.000000e+00> : vector<64x128xf32>
    %6 = tpu.matmul %4, %5, %cst {dimension_numbers = #tpu.dot_dimension_numbers<[1], [0], [0], [1], [0, 0, 1, 1], [], []>} : vector<64x128xbf16>, vector<128x128xbf16>, vector<64x128xf32> -> vector<64x128xf32>
    %c0_4 = arith.constant 0 : index
    %c0_5 = arith.constant 0 : index
    %7 = vector.load %arg3[%c0_4, %c0_5] : memref<8x128xf32, #tpu.memory_space<vmem>>, vector<1x128xf32>
    %cst_6 = arith.constant dense<0.000000e+00> : vector<128xf32>
    %8 = vector.multi_reduction <add>, %6, %cst_6 [0] : vector<64x128xf32> to vector<128xf32>
    %9 = vector.shape_cast %8 : vector<128xf32> to vector<1x128xf32>
    %10 = arith.addf %7, %9 : vector<1x128xf32>
    %c0_7 = arith.constant 0 : index
    %c0_8 = arith.constant 0 : index
    %11 = vector.load %arg3[%c0_7, %c0_8] : memref<8x128xf32, #tpu.memory_space<vmem>>, vector<1x128xf32>
    tpu.vector_store %arg3[%c0_7, %c0_8], %10 {strides = array<i32>} : memref<8x128xf32, #tpu.memory_space<vmem>>, vector<1x128xf32>,
    %c1 = arith.constant 1 : index
    %c0_9 = arith.constant 0 : index
    %12 = vector.load %arg3[%c1, %c0_9] : memref<8x128xf32, #tpu.memory_space<vmem>>, vector<1x128xf32>
    %13 = arith.mulf %6, %6 : vector<64x128xf32>
    %cst_10 = arith.constant dense<0.000000e+00> : vector<128xf32>
    %14 = vector.multi_reduction <add>, %13, %cst_10 [0] : vector<64x128xf32> to vector<128xf32>
    %15 = vector.shape_cast %14 : vector<128xf32> to vector<1x128xf32>
    %16 = arith.addf %12, %15 : vector<1x128xf32>
    %c1_11 = arith.constant 1 : index
    %c0_12 = arith.constant 0 : index
    %17 = vector.load %arg3[%c1_11, %c0_12] : memref<8x128xf32, #tpu.memory_space<vmem>>, vector<1x128xf32>
    tpu.vector_store %arg3[%c1_11, %c0_12], %16 {strides = array<i32>} : memref<8x128xf32, #tpu.memory_space<vmem>>, vector<1x128xf32>,
    return
  }
  func.func @transform_0(%arg0: i32) -> (i32, i32) {
    %c0_i32 = arith.constant 0 : i32
    %c0_i32_0 = arith.constant 0 : i32
    return %arg0, %c0_i32 : i32, i32
  }
  func.func @transform_1(%arg0: i32) -> (i32, i32) {
    %c0_i32 = arith.constant 0 : i32
    %c0_i32_0 = arith.constant 0 : i32
    %c0_i32_1 = arith.constant 0 : i32
    return %c0_i32, %c0_i32_0 : i32, i32
  }
  func.func @transform_2(%arg0: i32) -> (i32, i32) {
    %c0_i32 = arith.constant 0 : i32
    %c0_i32_0 = arith.constant 0 : i32
    %c0_i32_1 = arith.constant 0 : i32
    return %c0_i32, %c0_i32_0 : i32, i32
  }
}

</mosaic_0001>

<bundles_post_ra>
// kernel: tpu_custom_call.1
= control target key start
LH: loop header
LB: loop body
LE: loop exit
PB: predicated region body
PF: predicated region fallthrough
CT: control target
= control target key end

     0   :  { %7 = vsyncpa [#allocation3], 0  ;;  %s890_s0 = inlined_call_operand.hbm [shape: f32[256,128], index: 0, kind: input, shape index: {}]   ;;  %s891_s1 = inlined_call_operand.hbm [shape: bf16[128,128], index: 1, kind: input, shape index: {}]   ;;  %s892_s2 = inlined_call_operand.hbm [shape: f32[8,128], index: 2, kind: output, shape index: {}]  }
   0x1   :  { %9 = vsyncpa [#allocation3 + $0x1], 0 }
   0x2   :  { %10 = vsyncpa [#allocation6], 0 }
   0x3   :  { %11 = vsyncpa [#allocation4], 0  ;;  %s717_s9 = smov 0   ;;  %s719_s10 = smov 0  }
   0x4   :  { %s721_s11 = smov 0   ;;  %s723_s12 = smov 0  }
   0x5 LB: > { %s736_s13 = sadd.s32 4294967295, %s692_s12   ;;  %p37_p0 = scmp.ne.s32.totalorder %s684_s10, %s680_s9  ;;  %s692_s12 = sphi %s723_s12, %s908_s12   ;;  %s688_s11 = sphi %s721_s11, %s907_s11   ;;  %s684_s10 = sphi %s719_s10, %s906_s10   ;;  %s680_s9 = sphi %s717_s9, %s905_s9  }
   0x6   : > { %p893_p1 = scmp.eq.s32.totalorder %s736_s13, 0  ;;  %p421_p2 = scmp.ge.s32.totalorder %s692_s12, 1 }
   0x7   : > { %p90_p3 = scmp.lt.s32.totalorder %s692_s12, 5  ;;  %s694_s16 = smov [#allocation5]  }
   0x8   : > { %p745_p5 = por %p893_p1, %p37_p0  ;;  %s102_s17 = sshll.u32 %s694_s16, 4  ;;  %s103_s17 = int_to_ptr.vmem [resolvable:$true] %s102_s17 }
   0x9   : > { %p749_p6 = pnand %p421_p2, %p90_p3  ;;  %s762_s19 = sadd.s32 1, %s692_s12  }
   0xa   : > { %s896_s14 = scalar_select %p745_p5, 1, 0 }
   0xb   : > { %s897_s15 = scalar_select %p749_p6, 1, 0 }
   0xc   : > { %p506_p7 = pneg %p749_p6  ;;  %s24_s20 = sadd.s32 1, %s688_s11 }
   0xd   : > { %s21_s21 = ssub.s32 %s692_s12, %s762_s19  ;;  %s566_s24 = scalar_lea.hbm %s891_s1, 1024 }
   0xe   : > { %p757_p8 = pnand %p506_p7, %p893_p1  ;;  %p567_p9 = scmp.ne.s32.totalorder %s891_s1, %s566_s24 }
   0xf   : > { %p573_p13 = scmp.lt.u32.totalorder %s566_s24, %s891_s1 }
  0x10   : > { %p568_p10 = pneg %p757_p8 }
  0x12   : > { %p569_p11 = pnand %p568_p10, %p567_p9 }
  0x14   : > { %p570_p12 = pneg %p569_p11 }
  0x16   : > { %p575_p0 = pnand %p573_p13, %p570_p12 }
  0x18   : > { %578 = shalt.err (!%p575_p0)
}
  0x19   : > { %s579_s29 = scalar_lea.vmem %s103_s17, 1024  ;;  %p587_p4 = scmp.lt.s32.totalorder %s103_s17, %s103_s17 }
  0x1a   : > { %p580_p2 = scmp.ne.s32.totalorder %s103_s17, %s579_s29  ;;  %p588_p1 = scmp.lt.s32.totalorder %s579_s29, %s579_s29 }
  0x1c   : > { %p582_p3 = pnand %p580_p2, %p568_p10  ;;  %p589_p5 = por %p588_p1, %p587_p4 }
  0x1e   : > { %p583_p7 = pneg %p582_p3 }
  0x20   : > { %p590_p6 = pnand %p589_p5, %p583_p7 }
  0x22   : > { %593 = shalt.err (!%p590_p6)
}
  0x23   : > { %s695_s30 = smov 64   ;;  %s696_s3 = smov 4  }
  0x24   : > { %509 = dma.hbm_to_vmem [thread:$0]  (!%p757_p8), %s891_s1, 1024, %s103_s17, [#allocation6], %s695_s30, %s695_s30, %s696_s3  }
  0x25   : > { %p22_p9 = scmp.eq.s32.totalorder %s21_s21, 0  ;;  %p31_p10 = scmp.ne.s32.totalorder %s688_s11, %s684_s10 }
  0x26   : > { %p32_p1 = scmp.eq.s32.totalorder %s692_s12, 0  ;;  %p515_p4 = scmp.lt.s32.totalorder %s692_s12, 4 }
  0x27   : > { %s788_s6 = scalar_select %p22_p9, %s688_s11, %s24_s20  }
  0x28   : > { %p33_p5 = por %p32_p1, %p31_p10  ;;  %s116_s7 = sand.u32 1, %s688_s11  }
  0x29   : > { %s424_s8 = sshll.u32 %s116_s7, 6  ;;  %s443_s9 = sshll.u32 %s692_s12, 10 }
  0x2a   : > { %s795_s23 = scalar_lea.hbm %s890_s0, %s443_s9  ;;  %s120_s17 = scalar_lea.vmem [#allocation2], %s424_s8 }
  0x2b   : > { %s127_s18 = sshll.u32 %s120_s17, 4  ;;  %p799_p6 = pnand %p515_p4, %p33_p5  ;;  %s797_s18 = int_to_ptr.vmem [resolvable:$true] %s127_s18 }
  0x2c   : > { %s803_s12 = scalar_lea.sflag [#allocation3], %s116_s7  ;;  %s594_s21 = scalar_lea.hbm %s795_s23, 1024 }
  0x2d   : > { %p595_p8 = scmp.ne.s32.totalorder %s795_s23, %s594_s21  ;;  %p596_p11 = pneg %p799_p6 }
  0x2e   : > { %s599_s26 = scalar_lea.hbm %s890_s0, 4096  ;;  %p600_p0 = scmp.lt.u32.totalorder %s795_s23, %s890_s0 }
  0x2f   : > { %p597_p12 = pnand %p596_p11, %p595_p8  ;;  %p601_p2 = scmp.lt.u32.totalorder %s599_s26, %s594_s21 }
  0x30   : > { %p603_p7 = scmp.lt.u32.totalorder %s594_s21, %s795_s23 }
  0x31   : > { %p598_p13 = pneg %p597_p12  ;;  %p602_p3 = por %p601_p2, %p600_p0 }
  0x33   : > { %p604_p9 = por %p603_p7, %p602_p3 }
  0x35   : > { %p605_p10 = pnand %p604_p9, %p598_p13 }
  0x37   : > { %608 = shalt.err (!%p605_p10)
}
  0x38   : > { %s609_s29 = scalar_lea.vmem %s797_s18, 1024  ;;  %s697_s30 = smov [#allocation2]  }
  0x39   : > { %p610_p1 = scmp.ne.s32.totalorder %s797_s18, %s609_s29  ;;  %s614_s3 = sshll.u32 %s697_s30, 4  ;;  %s615_s3 = int_to_ptr.vmem [resolvable:$false] %s614_s3 }
  0x3a   : > { %s616_s4 = scalar_lea.vmem %s615_s3, 2048  ;;  %p617_p8 = scmp.lt.s32.totalorder %s797_s18, %s615_s3 }
  0x3b   : > { %p612_p4 = pnand %p610_p1, %p596_p11  ;;  %p618_p12 = scmp.lt.s32.totalorder %s616_s4, %s609_s29 }
  0x3d   : > { %p613_p5 = pneg %p612_p4  ;;  %p619_p0 = por %p618_p12, %p617_p8 }
  0x3f   : > { %p620_p2 = pnand %p619_p0, %p613_p5 }
  0x41   : > { %623 = shalt.err (!%p620_p2)
}
  0x42   : > { %s698_s5 = smov 128   ;;  %s699_s7 = smov 8  }
  0x43   : > { %513 = dma.hbm_to_vmem [thread:$0]  (!%p799_p6), %s795_s23, 1024, %s797_s18, %s803_s12, %s698_s5, %s698_s5, %s699_s7  }
  0x44   : > { %p900_p11 = scmp.ne.s32.totalorder %s897_s15, 0 }
  0x45   : > { %s141_s8 = sand.u32 (!%p900_p11), 1, %s684_s10   ;;  %p901_p13 = scmp.ne.s32.totalorder (!%p900_p11), %s896_s14, 0 }
  0x46   : > { %139 = sbr.rel (%p900_p11) target bundleno = 383 (0x17f), region = 28  ;;  %s428_s9 = sshll.u32 (!%p900_p11), %s141_s8, 6 }
  0x47   : > { %s142_s16 = scalar_lea.sflag (!%p900_p11), [#allocation3], %s141_s8  ;;  %s834_s22 = scalar_lea.vmem (!%p900_p11), [#allocation2], %s428_s9 }
  0x4d   : > { %667 = dma.done.wait (%p901_p13), %s142_s16, 1024  }
  0x4e   : > { %669 = vsyncadd (%p901_p13), %s142_s16, 4294966272  ;;  %p902_p3 = scmp.eq.s32.totalorder %s736_s13, 0 }
  0x50   : > { %671 = dma.done.wait (%p902_p3), [#allocation6], 1024   ;;  %p903_p6 = pmov %p902_p3 }
  0x51   : > { %p904_p7 = scmp.ne.s32.totalorder %s736_s13, 0 }
  0x52   : > { %673 = vsyncadd (%p903_p6), [#allocation6], 4294966272  ;;  %v700_v0 = vmov (!%p904_p7), 0.0  }
  0x53   : > { %170 = sbr.rel (%p904_p7) target bundleno = 90 (0x5a), region = 40  ;;  %171 = vst [vmem:[#allocation7] sm:$0xff] (!%p904_p7), %v700_v0 }
  0x5a PF: > { %v558_v1 = vld [vmem:[#allocation5] sm:$0xff]   ;;  %v559_v2 = vld [vmem:[#allocation5 + $0x8] sm:$0xff]   ;;  %v560_v3 = vld [vmem:[#allocation5 + $0x10] sm:$0xff]   ;;  %s701_s14 = smov [#allocation7]   ;;  %p517_p9 = scmp.eq.s32.totalorder %s736_s13, 3 }
  0x5b   : > { %456 = vmatprep.subr.bf16.mxu0 %v558_v1  ;;  %480 = vmatprep.subr.bf16.mxu1 %v558_v1  ;;  %v561_v4 = vld [vmem:[#allocation5 + $0x18] sm:$0xff]   ;;  %v172_v5 = vld [vmem:[%s834_s22] sm:$0xff]  ;;  %v173_v6 = vld [vmem:[%s834_s22 + $0x8] sm:$0xff]  ;;  %s360_s15 = sshll.u32 %s701_s14, 4  ;;  %s361_s15 = int_to_ptr.vmem [resolvable:$true] %s360_s15 }
  0x5c   : > { %457 = vmatpush3.bf16.msra.mxu0 %v558_v1  ;;  %488 = vmatpush3.bf16.msra.mxu1 %v558_v1  ;;  %v180_v7 = vpack.c.bf16 %v173_v6, %v172_v5  ;;  %v176_v8 = vld [vmem:[%s834_s22 + $0x20] sm:$0xff]  ;;  %v177_v9 = vld [vmem:[%s834_s22 + $0x28] sm:$0xff]  ;;  %v564_v13 = vld [vmem:[#allocation5 + $0x30] sm:$0xff]   ;;  %s624_s23 = scalar_lea.vmem %s361_s15, 128  ;;  %p631_p5 = scmp.lt.s32.totalorder %s361_s15, %s361_s15 }
  0x5d   : > { %458 = vmatprep.subr.bf16.mxu0 %v559_v2  ;;  %481 = vmatprep.subr.bf16.mxu1 %v559_v2  ;;  %v182_v10 = vpack.c.bf16 %v177_v9, %v176_v8  ;;  %v562_v11 = vld [vmem:[#allocation5 + $0x20] sm:$0xff]   ;;  %v563_v12 = vld [vmem:[#allocation5 + $0x28] sm:$0xff]   ;;  %v565_v14 = vld [vmem:[#allocation5 + $0x38] sm:$0xff]   ;;  %p625_p10 = scmp.ne.s32.totalorder %s361_s15, %s624_s23  ;;  %p632_p8 = scmp.lt.s32.totalorder %s624_s23, %s624_s23 }
  0x5e   : > { %472 = vmatprep.mubr.bf16.mxu0 %v180_v7  ;;  %v174_v15 = vld [vmem:[%s834_s22 + $0x10] sm:$0xff]  ;;  %v175_v16 = vld [vmem:[%s834_s22 + $0x18] sm:$0xff]  ;;  %v313_v60 = vld [vmem:[#allocation7] sm:$0x1] }
  0x5f   : > { %476 = vmatprep.mubr.bf16.mxu1 %v182_v10  ;;  %v178_v17 = vld [vmem:[%s834_s22 + $0x30] sm:$0xff]  ;;  %v179_v18 = vld [vmem:[%s834_s22 + $0x38] sm:$0xff]  ;;  %v181_v19 = vpack.c.bf16 %v175_v16, %v174_v15  ;;  %v329_v63 = vld [vmem:[#allocation7 + $0x1] sm:$0x1]  ;;  %p626_p1 = pnand %p625_p10, %p517_p9  ;;  %p633_p12 = por %p632_p8, %p631_p5 }
  0x60   : > { %459 = vmatpush3.bf16.msra.mxu0 %v559_v2  ;;  %489 = vmatpush3.bf16.msra.mxu1 %v559_v2  ;;  %v183_v20 = vpack.c.bf16 %v179_v18, %v178_v17 }
  0x61   : > { %460 = vmatprep.subr.bf16.mxu0 %v560_v3  ;;  %482 = vmatprep.subr.bf16.mxu1 %v560_v3  ;;  %p627_p4 = pneg %p626_p1 }
  0x63   : > { %p634_p0 = pnand %p633_p12, %p627_p4 }
  0x64   : > { %461 = vmatpush3.bf16.msra.mxu0 %v560_v3  ;;  %490 = vmatpush3.bf16.msra.mxu1 %v560_v3 }
  0x65   : > { %462 = vmatprep.subr.bf16.mxu0 %v561_v4  ;;  %483 = vmatprep.subr.bf16.mxu1 %v561_v4 }
  0x68   : > { %463 = vmatpush3.bf16.msra.mxu0 %v561_v4  ;;  %491 = vmatpush3.bf16.msra.mxu1 %v561_v4 }
  0x69   : > { %464 = vmatprep.subr.bf16.mxu0 %v562_v11  ;;  %484 = vmatprep.subr.bf16.mxu1 %v562_v11 }
  0x6c   : > { %465 = vmatpush3.bf16.msra.mxu0 %v562_v11  ;;  %492 = vmatpush3.bf16.msra.mxu1 %v562_v11 }
  0x6d   : > { %466 = vmatprep.subr.bf16.mxu0 %v563_v12  ;;  %485 = vmatprep.subr.bf16.mxu1 %v563_v12 }
  0x70   : > { %467 = vmatpush3.bf16.msra.mxu0 %v563_v12  ;;  %493 = vmatpush3.bf16.msra.mxu1 %v563_v12 }
  0x71   : > { %468 = vmatprep.subr.bf16.mxu0 %v564_v13  ;;  %486 = vmatprep.subr.bf16.mxu1 %v564_v13 }
  0x74   : > { %469 = vmatpush3.bf16.msra.mxu0 %v564_v13  ;;  %494 = vmatpush3.bf16.msra.mxu1 %v564_v13 }
  0x75   : > { %470 = vmatprep.subr.bf16.mxu0 %v565_v14  ;;  %487 = vmatprep.subr.bf16.mxu1 %v565_v14 }
  0x78   : > { %471 = vmatpush3.bf16.msra.mxu0 %v565_v14  ;;  %495 = vmatpush3.bf16.msra.mxu1 %v565_v14 }
  0x7b   : > { %473 = vmatmul.mubr.bf16.vlgmr.msra.gmra.mrb[0].mxu0 %v181_v19  ;;  %477 = vmatmul.mubr.bf16.vlgmr.msra.gmra.mrb[0].mxu1 %v183_v20 }
 0x14e   : > { %v474_v21 = vpop.f32.mrb[0].mxu0  ;;  %v478_v22 = vpop.f32.mrb[0].mxu1 }
 0x14f   : > { %v282_v23 = vpop.f32.mrb[1].mxu0  ;;  %v298_v24 = vpop.f32.mrb[1].mxu1  ;;  %v332_v32 = vmul.f32 %v474_v21, %v474_v21  ;;  %v336_v44 = vmul.f32 %v478_v22, %v478_v22 }
 0x150   : > { %v475_v25 = vpop.f32.mrb[2].mxu0  ;;  %v479_v26 = vpop.f32.mrb[2].mxu1  ;;  %v330_v29 = vmul.f32 %v282_v23, %v282_v23  ;;  %v334_v38 = vmul.f32 %v298_v24, %v298_v24 }
 0x151   : > { %v285_v27 = vpop.f32.mrb[3].mxu0  ;;  %v301_v28 = vpop.f32.mrb[3].mxu1  ;;  %v333_v35 = vmul.f32 %v475_v25, %v475_v25  ;;  %v337_v47 = vmul.f32 %v479_v26, %v479_v26 }
 0x152   : > { %v314_v30 = vadd.f32 %v285_v27, %v282_v23  ;;  %v331_v31 = vmul.f32 %v285_v27, %v285_v27  ;;  %v335_v43 = vmul.f32 %v301_v28, %v301_v28 }
 0x154   : > { %v315_v33 = vadd.f32 %v474_v21, %v314_v30  ;;  %v338_v34 = vadd.f32 %v331_v31, %v330_v29 }
 0x156   : > { %v339_v36 = vadd.f32 %v338_v34, %v332_v32  ;;  %v316_v37 = vadd.f32 %v475_v25, %v315_v33 }
 0x158   : > { %v317_v39 = vadd.f32 %v316_v37, %v298_v24  ;;  %v340_v40 = vadd.f32 %v339_v36, %v333_v35 }
 0x15a   : > { %v341_v41 = vadd.f32 %v340_v40, %v334_v38  ;;  %v318_v42 = vadd.f32 %v317_v39, %v301_v28 }
 0x15c   : > { %v319_v45 = vadd.f32 %v478_v22, %v318_v42  ;;  %v342_v46 = vadd.f32 %v341_v41, %v335_v43 }
 0x15e   : > { %v320_v48 = vadd.f32 %v479_v26, %v319_v45  ;;  %v343_v49 = vadd.f32 %v342_v46, %v336_v44 }
 0x160   : > { %v321_v50 = vrot.slane %v320_v48, 4  ;;  %v344_v51 = vadd.f32 %v343_v49, %v337_v47 }
 0x162   : > { %v322_v52 = vadd.f32 %v321_v50, %v320_v48  ;;  %v345_v53 = vrot.slane %v344_v51, 4 }
 0x164   : > { %v323_v54 = vrot.slane %v322_v52, 2  ;;  %v346_v55 = vadd.f32 %v345_v53, %v344_v51 }
 0x166   : > { %v324_v56 = vadd.f32 %v323_v54, %v322_v52  ;;  %v347_v57 = vrot.slane %v346_v55, 2 }
 0x168   : > { %v325_v58 = vrot.slane %v324_v56, 1  ;;  %v348_v59 = vadd.f32 %v347_v57, %v346_v55 }
 0x16a   : > { %v326_v61 = vadd.f32 %v325_v58, %v324_v56  ;;  %v349_v62 = vrot.slane %v348_v59, 1 }
 0x16c   : > { %v327_v0 = vadd.f32 %v326_v61, %v313_v60  ;;  %v350_v1 = vadd.f32 %v349_v62, %v348_v59 }
 0x16e   : > { %328 = vst [vmem:[#allocation7] sm:$0x1] %v327_v0  ;;  %v351_v2 = vadd.f32 %v350_v1, %v329_v63 }
 0x170   : > { %352 = vst [vmem:[#allocation7 + $0x1] sm:$0x1] %v351_v2 }
 0x171   : > { %637 = shalt.err (!%p634_p0)
}
 0x172   : > { %s638_s20 = scalar_lea.hbm %s892_s2, 128 }
 0x173   : > { %p639_p2 = scmp.ne.s32.totalorder %s892_s2, %s638_s20  ;;  %p644_p3 = scmp.lt.u32.totalorder %s638_s20, %s892_s2 }
 0x175   : > { %p640_p11 = pnand %p639_p2, %p517_p9 }
 0x177   : > { %p641_p13 = pneg %p640_p11 }
 0x179   : > { %p646_p6 = pnand %p644_p3, %p641_p13 }
 0x17b   : > { %649 = shalt.err (!%p646_p6)
}
 0x17c   : > { %503 = dma.vmem_to_hbm [thread:$0]  (%p517_p9), %s361_s15, 128, %s892_s2, [#allocation4]  }
 0x17d   : > { %675 = dma.done.wait (%p517_p9), [#allocation4], 128  }
 0x17e   : > { %677 = vsyncadd (%p517_p9), [#allocation4], 4294967168 }
 0x17f PF: > { %p14_p7 = scmp.ge.s32.totalorder %s762_s19, 6   ;;  %s905_s9 = smov %s684_s10 }
 0x180   : > { %s906_s10 = smov %s688_s11  ;;  %s907_s11 = smov %s788_s6 }
 0x181   : > { %s908_s12 = smov %s762_s19  ;;  %16 = sbr.rel (!%p14_p7) target bundleno = 5 (0x5), region = 73 }
 0x188   :  { %373 = vsyncpa [#allocation3], 1 }
 0x189   :  { %375 = vsyncpa [#allocation3 + $0x1], 1 }
 0x18a   :  { %376 = vsyncpa [#allocation6], 1 }
 0x18b   :  { %377 = vsyncpa [#allocation4], 1 }
 0x18c   :  { %379 = vsyncpa [#allocation4 + $0x1], 1 }

</bundles_post_ra>
